<compile_context>
chip_gen: v6e
topology: v6e:2x2x1
jax: 0.10.0
libtpu: 0.0.40
codegen_flags: <defaults>
</compile_context>

<pallas_src>
import jax
import jax.numpy as jnp
from jax.experimental import pallas as pl
from jax.experimental.pallas import tpu as pltpu

_TARGET_BLOCK_BYTES = 4 * 1024 * 1024   # ~4 MiB per block (per buffer)

_SIGN_MASK = 0x80000000
_EXPO_MASK = 0x7F800000
_MANT_MASK = 0x007FFFFF
_EXPO_ONE = 0x00800000       # +1 in the float32 exponent field
_SQRT2_MANT = 0x003504F3     # mantissa field of float32(sqrt(2)) = 0x3FB504F3


def _quant_base_kernel(x_ref, o_ref):
    # Nearest signed power-of-two via exponent bit manipulation (no EUP ops):
    #   |x| = 2^e * 1.m  rounds up to 2^(e+1) iff 1.m > sqrt(2), else to 2^e.
    # Zero (exponent field 0, mantissa 0) maps to +/-0 automatically.
    x = x_ref[...].astype(jnp.float32)
    bits = pltpu.bitcast(x, jnp.uint32)
    sign = bits & jnp.uint32(_SIGN_MASK)
    expo = bits & jnp.uint32(_EXPO_MASK)
    mant = bits & jnp.uint32(_MANT_MASK)
    # mantissa fits in 23 bits -> signed compare is safe and cheap on the VALU
    round_up = mant.astype(jnp.int32) > jnp.int32(_SQRT2_MANT)
    expo_q = jnp.where(round_up, expo + jnp.uint32(_EXPO_ONE), expo)
    y_bits = sign | expo_q
    # inf / NaN propagate unchanged (matches the transcendental formulation)
    y_bits = jnp.where(expo == jnp.uint32(_EXPO_MASK), bits, y_bits)
    o_ref[...] = pltpu.bitcast(y_bits, jnp.float32).astype(o_ref.dtype)


def _choose_width(n):
    """Largest multiple-of-128 (<=1024) that divides n; else fall back to 128+pad."""
    for w in (1024, 896, 768, 640, 512, 384, 256, 128):
        if n % w == 0:
            return w, False
    return 128, True


def quan_base_layer(x):
    """Forward pass of QuanBaseLayer: elementwise power-of-two quantization.

    Accepts any shape / float dtype; returns the same shape / dtype.
    """
    orig_shape = x.shape
    orig_dtype = x.dtype
    n = x.size
    if n == 0:
        return x

    itemsize = jnp.dtype(orig_dtype).itemsize
    align = max(8, 32 // itemsize)          # sublane multiple: 8 f32, 16 bf16/f16

    width, needs_pad = _choose_width(n)
    flat = x.reshape(-1)
    if needs_pad:
        # Pad only up to the next multiple of width (128); the ragged last grid
        # block is masked by Pallas, so no full-tile padding is needed.
        n_pad = pl.cdiv(n, width) * width
        flat = jnp.pad(flat, (0, n_pad - n))
    else:
        n_pad = n

    rows = n_pad // width
    x2d = flat.reshape(rows, width)

    if rows <= align:
        block_rows = rows                   # single full-extent block
    else:
        target = max(align,
                     (_TARGET_BLOCK_BYTES // (width * itemsize)) // align * align)
        # Cap at ~half the rows so medium/large tensors get >=2 grid steps
        # (v7x has 2 TensorCores; the extra step costs ~0.35us on v5e/v6e).
        half = pl.cdiv(pl.cdiv(rows, 2), align) * align
        block_rows = min(target, half)
    grid = (pl.cdiv(rows, block_rows),)

    out2d = pl.pallas_call(
        _quant_base_kernel,
        out_shape=jax.ShapeDtypeStruct((rows, width), orig_dtype),
        grid_spec=pltpu.PrefetchScalarGridSpec(
            num_scalar_prefetch=0,
            grid=grid,
            in_specs=[pl.BlockSpec((block_rows, width), lambda i: (i, 0))],
            out_specs=pl.BlockSpec((block_rows, width), lambda i: (i, 0)),
        ),
        compiler_params=pltpu.CompilerParams(
            dimension_semantics=("parallel",),
            vmem_limit_bytes=48 * 1024 * 1024,
        ),
        cost_estimate=pl.CostEstimate(
            flops=n, transcendentals=0, bytes_accessed=2 * n * itemsize),
    )(x2d)

    out_flat = out2d.reshape(-1)
    if n_pad != n:
        out_flat = out_flat[:n]
    return out_flat.reshape(orig_shape)


def _reference(x):
    """Bit-exact pure-JAX reference of the same nearest-power-of-two rule."""
    x = x.astype(jnp.float32)
    bits = jax.lax.bitcast_convert_type(x, jnp.uint32)
    sign = bits & jnp.uint32(_SIGN_MASK)
    expo = bits & jnp.uint32(_EXPO_MASK)
    mant = bits & jnp.uint32(_MANT_MASK)
    round_up = mant > jnp.uint32(_SQRT2_MANT)
    expo_q = jnp.where(round_up, expo + jnp.uint32(_EXPO_ONE), expo)
    y_bits = jnp.where(expo == jnp.uint32(_EXPO_MASK), bits, sign | expo_q)
    return jax.lax.bitcast_convert_type(y_bits, jnp.float32)


if __name__ == "__main__":
    key = jax.random.PRNGKey(0)
    k1, k2, k3, k4 = jax.random.split(key, 4)

    # Small NCHW activation tensor consistent with a QAT conv layer.
    x = jax.random.normal(k1, (2, 4, 16, 16), dtype=jnp.float32)
    x = x.at[0, 0, 0, :4].set(0.0)   # exercise the zero path
    y = quan_base_layer(x)
    jax.block_until_ready(y)
    assert y.shape == x.shape and y.dtype == x.dtype
    assert bool(jnp.all(y == _reference(x)))

    # Medium tensor: divisor-width path, no padding, >=2 grid steps.
    x_med = jax.random.normal(k2, (4, 16, 64, 64), dtype=jnp.float32)
    y_med = quan_base_layer(x_med)
    jax.block_until_ready(y_med)
    assert bool(jnp.all(y_med == _reference(x_med)))

    # Ragged size (not a multiple of 128): minimal pad + masked edge block.
    x_odd = jax.random.normal(k3, (3, 5, 7, 11), dtype=jnp.float32)
    y_odd = quan_base_layer(x_odd)
    jax.block_until_ready(y_odd)
    assert bool(jnp.all(y_odd == _reference(x_odd)))

    # bf16 path (packed sublanes, 16-row alignment).
    x_bf = jax.random.normal(k4, (2, 8, 16, 16), dtype=jnp.bfloat16)
    y_bf = quan_base_layer(x_bf)
    jax.block_until_ready(y_bf)
    ref_bf = _reference(x_bf.astype(jnp.float32)).astype(jnp.bfloat16)
    assert y_bf.dtype == x_bf.dtype
    assert bool(jnp.all(y_bf == ref_bf))

    print("KERNEL_OK")
</pallas_src>

<mosaic_0001>
module attributes {stable_mosaic.version = 11 : i64} {
  func.func @_quant_base_kernel(%arg0: i32, %arg1: memref<2x1024xf32, #tpu.memory_space<vmem>>, %arg2: memref<2x1024xf32, #tpu.memory_space<vmem>>) attributes {dimension_semantics = [#tpu.dimension_semantics<parallel>], iteration_bounds = array<i64: 1>, scalar_prefetch = 0 : i64, scratch_operands = 0 : i64, tpu.core_type = #tpu.core_type<tc>, window_params = [{transform_indices = @transform_0, window_bounds = array<i64: 2, 1024>}, {transform_indices = @transform_1, window_bounds = array<i64: 2, 1024>}]} {
    %c0 = arith.constant 0 : index
    %c0_0 = arith.constant 0 : index
    %0 = vector.load %arg1[%c0, %c0_0] : memref<2x1024xf32, #tpu.memory_space<vmem>>, vector<2x1024xf32>
    %1 = tpu.bitcast %0 : vector<2x1024xf32> -> vector<2x1024xi32>
    %c-2147483648_i32 = arith.constant -2147483648 : i32
    %2 = vector.broadcast %c-2147483648_i32 : i32 to vector<2x1024xi32>
    %3 = arith.andi %1, %2 : vector<2x1024xi32>
    %c2139095040_i32 = arith.constant 2139095040 : i32
    %4 = vector.broadcast %c2139095040_i32 : i32 to vector<2x1024xi32>
    %5 = arith.andi %1, %4 : vector<2x1024xi32>
    %c8388607_i32 = arith.constant 8388607 : i32
    %6 = vector.broadcast %c8388607_i32 : i32 to vector<2x1024xi32>
    %7 = arith.andi %1, %6 : vector<2x1024xi32>
    %c3474675_i32 = arith.constant 3474675 : i32
    %8 = vector.broadcast %c3474675_i32 : i32 to vector<2x1024xi32>
    %9 = arith.cmpi sgt, %7, %8 : vector<2x1024xi32>
    %c8388608_i32 = arith.constant 8388608 : i32
    %10 = vector.broadcast %c8388608_i32 : i32 to vector<2x1024xi32>
    %11 = arith.addi %5, %10 : vector<2x1024xi32>
    %12 = arith.select %9, %11, %5 : vector<2x1024xi1>, vector<2x1024xi32>
    %13 = arith.ori %3, %12 : vector<2x1024xi32>
    %c2139095040_i32_1 = arith.constant 2139095040 : i32
    %14 = vector.broadcast %c2139095040_i32_1 : i32 to vector<2x1024xi32>
    %15 = arith.cmpi eq, %5, %14 : vector<2x1024xi32>
    %16 = arith.select %15, %1, %13 : vector<2x1024xi1>, vector<2x1024xi32>
    %17 = tpu.bitcast %16 : vector<2x1024xi32> -> vector<2x1024xf32>
    %c0_2 = arith.constant 0 : index
    %c0_3 = arith.constant 0 : index
    %18 = vector.load %arg2[%c0_2, %c0_3] : memref<2x1024xf32, #tpu.memory_space<vmem>>, vector<2x1024xf32>
    tpu.vector_store %arg2[%c0_2, %c0_3], %17 {strides = array<i32>} : memref<2x1024xf32, #tpu.memory_space<vmem>>, vector<2x1024xf32>,
    return
  }
  func.func @transform_0(%arg0: i32) -> (i32, i32) {
    %c0_i32 = arith.constant 0 : i32
    %c0_i32_0 = arith.constant 0 : i32
    return %arg0, %c0_i32 : i32, i32
  }
  func.func @transform_1(%arg0: i32) -> (i32, i32) {
    %c0_i32 = arith.constant 0 : i32
    %c0_i32_0 = arith.constant 0 : i32
    return %arg0, %c0_i32 : i32, i32
  }
}

</mosaic_0001>

<bundles_post_ra>
// kernel: tpu_custom_call.1
= control target key start
LH: loop header
LB: loop body
LE: loop exit
PB: predicated region body
PF: predicated region fallthrough
CT: control target
= control target key end

     0   :  { %6 = vsyncpa [#allocation3], 0  ;;  %s286_s0 = inlined_call_operand.hbm [shape: f32[2,1024], index: 0, kind: input, shape index: {}]   ;;  %s287_s1 = inlined_call_operand.hbm [shape: f32[2,1024], index: 1, kind: output, shape index: {}]  }
   0x1   :  { %7 = vsyncpa [#allocation4], 0  ;;  %s233_s6 = smov [#allocation2]  }
   0x2   :  { %s14_s7 = sshll.u32 %s233_s6, 4  ;;  %s15_s7 = int_to_ptr.vmem [resolvable:$true] %s14_s7 }
   0x3   :  { %s197_s8 = scalar_lea.vmem %s15_s7, 256  ;;  %p202_p1 = scmp.lt.s32.totalorder %s15_s7, %s15_s7 }
   0x4   :  { %p198_p0 = scmp.ne.s32.totalorder %s15_s7, %s197_s8  ;;  %p203_p2 = scmp.lt.s32.totalorder %s197_s8, %s197_s8 }
   0x6   :  { %p204_p3 = por %p203_p2, %p202_p1 }
   0x8   :  { %p205_p4 = pnand %p204_p3, %p198_p0 }
   0xa   :  { %208 = shalt.err (!%p205_p4)
}
   0xb   :  { %17 = dma.hbm_to_vmem [thread:$0]  %s286_s0, 256, %s15_s7, [#allocation3]  }
   0xc   :  { %229 = dma.done.wait [#allocation3], 256  }
   0xd   :  { %230 = vsyncadd [#allocation3], 4294967040  ;;  %v29_v0 = vlaneseq  ;;  %v234_v1 = vmov 1983009808   ;;  %v21_v6 = vld [vmem:[#allocation2] sm:$0xff]  ;;  %v22_v7 = vld [vmem:[#allocation2 + $0x8] sm:$0xff] }
   0xe   :  { %v27_v2 = vunpack.c.l.s4 %v234_v1  ;;  %v25_v8 = vcombine.high %v21_v6, %v21_v6  ;;  %v42_v10 = vcombine.high %v22_v7, %v22_v7  ;;  %s235_s0 = smov [#allocation5]  }
   0xf   :  { %v30_v3 = vshrl.u32 %v29_v0, 7  ;;  %s175_s11 = sshll.u32 %s235_s0, 4  ;;  %s176_s11 = int_to_ptr.vmem [resolvable:$true] %s175_s11 }
  0x10   :  { %v28_v4 = vunpack.c.0.s8 %v27_v2  ;;  %s209_s12 = scalar_lea.vmem %s176_s11, 256  ;;  %p214_p6 = scmp.lt.s32.totalorder %s176_s11, %s176_s11 }
  0x11   :  { %p210_p5 = scmp.ne.s32.totalorder %s176_s11, %s209_s12  ;;  %p215_p7 = scmp.lt.s32.totalorder %s209_s12, %s209_s12 }
  0x12   :  { %v249_v5 = vsub.s32 %v28_v4, %v30_v3 }
  0x13   :  { %p216_p8 = por %p215_p7, %p214_p6 }
  0x14   :  { %v32_v9 = vrot.slane %v21_v6, %v249_v5  ;;  %v253_v11 = vrot.slane %v22_v7, %v249_v5  ;;  %v39_v12 = vrot.slane %v25_v8, %v249_v5  ;;  %v257_v17 = vrot.slane %v42_v10, %v249_v5 }
  0x15   :  { %p217_p9 = pnand %p216_p8, %p210_p5 }
  0x16   :  { %v40_v13 = vcombine.high %v32_v9, %v32_v9  ;;  %v59_v14 = vand.u32 2147483648, %v32_v9  ;;  %v67_v15 = vand.u32 2139095040, %v32_v9  ;;  %v75_v16 = vand.u32 8388607, %v32_v9 }
  0x17   :  { %v261_v18 = vcombine.high %v253_v11, %v253_v11  ;;  %v63_v19 = vand.u32 2147483648, %v253_v11  ;;  %v41_v20 = vcombine.high %v39_v12, %v39_v12  ;;  %v61_v22 = vand.u32 2147483648, %v39_v12 }
  0x18   :  { %v60_v21 = vand.u32 2147483648, %v40_v13  ;;  %v68_v23 = vand.u32 2139095040, %v40_v13  ;;  %v69_v24 = vand.u32 2139095040, %v39_v12  ;;  %v76_v25 = vand.u32 8388607, %v40_v13 }
  0x19   :  { %v77_v26 = vand.u32 8388607, %v39_v12  ;;  %v91_v27 = vadd.s32 8388608, %v67_v15  ;;  %v62_v28 = vand.u32 2147483648, %v41_v20  ;;  %v70_v29 = vand.u32 2139095040, %v41_v20 }
  0x1a   :  { %v78_v30 = vand.u32 8388607, %v41_v20  ;;  %vm83_vm0 = vcmp.gt.s32.totalorder %v75_v16, 3474675  ;;  %vm84_vm1 = vcmp.gt.s32.totalorder %v76_v25, 3474675  ;;  %v58_v43 = vcombine.high %v257_v17, %v257_v17 }
  0x1b   :  { %vm85_vm2 = vcmp.gt.s32.totalorder %v77_v26, 3474675  ;;  %v92_v31 = vadd.s32 8388608, %v68_v23  ;;  %v93_v32 = vadd.s32 8388608, %v69_v24  ;;  %v94_v33 = vadd.s32 8388608, %v70_v29 }
  0x1c   :  { %vm86_vm3 = vcmp.gt.s32.totalorder %v78_v30, 3474675  ;;  %v99_v34 = vsel %vm83_vm0, %v91_v27, %v67_v15  ;;  %vm115_vm4 = vcmp.eq.s32.totalorder %v67_v15, 2139095040  ;;  %vm116_vm5 = vcmp.eq.s32.totalorder %v68_v23, 2139095040 }
  0x1d   :  { %v100_v35 = vsel %vm84_vm1, %v92_v31, %v68_v23  ;;  %v101_v36 = vsel %vm85_vm2, %v93_v32, %v69_v24  ;;  %v107_v37 = vor.u32 %v99_v34, %v59_v14  ;;  %v102_v38 = vsel %vm86_vm3, %v94_v33, %v70_v29 }
  0x1e   :  { %v108_v39 = vor.u32 %v100_v35, %v60_v21  ;;  %v109_v40 = vor.u32 %v101_v36, %v61_v22  ;;  %vm117_vm6 = vcmp.eq.s32.totalorder %v69_v24, 2139095040  ;;  %v110_v41 = vor.u32 %v102_v38, %v62_v28 }
  0x1f   :  { %vm118_vm7 = vcmp.eq.s32.totalorder %v70_v29, 2139095040  ;;  %v123_v42 = vsel %vm115_vm4, %v32_v9, %v107_v37  ;;  %v64_v46 = vand.u32 2147483648, %v261_v18  ;;  %v65_v47 = vand.u32 2147483648, %v257_v17 }
  0x20   :  { %v124_v44 = vsel %vm116_vm5, %v40_v13, %v108_v39  ;;  %v125_v45 = vsel %vm117_vm6, %v39_v12, %v109_v40  ;;  %v126_v48 = vsel %vm118_vm7, %v41_v20, %v110_v41  ;;  %v66_v50 = vand.u32 2147483648, %v58_v43 }
  0x21   :  { %v131_v49 = vcombine.low %v123_v42, %v124_v44  ;;  %v71_v51 = vand.u32 2139095040, %v253_v11  ;;  %v132_v52 = vcombine.low %v125_v45, %v126_v48  ;;  %v72_v53 = vand.u32 2139095040, %v261_v18 }
  0x22   :  { %v73_v54 = vand.u32 2139095040, %v257_v17  ;;  %v74_v55 = vand.u32 2139095040, %v58_v43  ;;  %v79_v57 = vand.u32 8388607, %v253_v11  ;;  %v80_v58 = vand.u32 8388607, %v261_v18 }
  0x23   :  { %v139_v56 = vrot.slane %v131_v49, %v249_v5  ;;  %v81_v59 = vand.u32 8388607, %v257_v17  ;;  %v146_v60 = vrot.slane %v132_v52, %v249_v5  ;;  %v82_v61 = vand.u32 8388607, %v58_v43 }
  0x24   :  { %v95_v62 = vadd.s32 8388608, %v71_v51  ;;  %v96_v63 = vadd.s32 8388608, %v72_v53  ;;  %vm87_vm8 = vcmp.gt.s32.totalorder %v79_v57, 3474675  ;;  %vm88_vm9 = vcmp.gt.s32.totalorder %v80_v58, 3474675 }
  0x25   :  { %vm89_vm10 = vcmp.gt.s32.totalorder %v81_v59, 3474675  ;;  %v147_v0 = vcombine.low %v139_v56, %v146_v60  ;;  %vm90_vm11 = vcmp.gt.s32.totalorder %v82_v61, 3474675  ;;  %v97_v1 = vadd.s32 8388608, %v73_v54 }
  0x26   :  { %v98_v2 = vadd.s32 8388608, %v74_v55  ;;  %v103_v3 = vsel %vm87_vm8, %v95_v62, %v71_v51  ;;  %v104_v4 = vsel %vm88_vm9, %v96_v63, %v72_v53  ;;  %vm119_vm12 = vcmp.eq.s32.totalorder %v71_v51, 2139095040 }
  0x27   :  { %vm120_vm13 = vcmp.eq.s32.totalorder %v72_v53, 2139095040  ;;  %167 = vst [vmem:[#allocation5] sm:$0xff] %v147_v0  ;;  %v105_v6 = vsel %vm89_vm10, %v97_v1, %v73_v54  ;;  %v111_v8 = vor.u32 %v103_v3, %v63_v19  ;;  %v112_v9 = vor.u32 %v104_v4, %v64_v46 }
  0x28   :  { %v106_v7 = vsel %vm90_vm11, %v98_v2, %v74_v55  ;;  %v113_v10 = vor.u32 %v105_v6, %v65_v47  ;;  %vm121_vm14 = vcmp.eq.s32.totalorder %v73_v54, 2139095040  ;;  %vm122_vm15 = vcmp.eq.s32.totalorder %v74_v55, 2139095040 }
  0x29   :  { %v114_v12 = vor.u32 %v106_v7, %v66_v50  ;;  %v127_v13 = vsel %vm119_vm12, %v253_v11, %v111_v8  ;;  %v128_v14 = vsel %vm120_vm13, %v261_v18, %v112_v9 }
  0x2a   :  { %v129_v15 = vsel %vm121_vm14, %v257_v17, %v113_v10  ;;  %v148_v20 = vcombine.low %v127_v13, %v128_v14 }
  0x2b   :  { %v130_v16 = vsel %vm122_vm15, %v58_v43, %v114_v12 }
  0x2c   :  { %v149_v21 = vcombine.low %v129_v15, %v130_v16  ;;  %v156_v22 = vrot.slane %v148_v20, %v249_v5 }
  0x2e   :  { %v163_v19 = vrot.slane %v149_v21, %v249_v5 }
  0x30   :  { %v164_v23 = vcombine.low %v156_v22, %v163_v19 }
  0x32   :  { %168 = vst [vmem:[#allocation5 + $0x8] sm:$0xff] %v164_v23 }
  0x33   :  { %220 = shalt.err (!%p217_p9)
}
  0x34   :  { %178 = dma.vmem_to_hbm [thread:$0]  %s176_s11, 256, %s287_s1, [#allocation4]  }
  0x35   :  { %231 = dma.done.wait [#allocation4], 256  }
  0x36   :  { %232 = vsyncadd [#allocation4], 4294967040 }
  0x37   :  { %182 = vsyncpa [#allocation3], 1 }
  0x38   :  { %183 = vsyncpa [#allocation4], 1 }

</bundles_post_ra>
